<compile_context>
chip_gen: v7x
topology: tpu7x:2x2x1
jax: 0.10.0
libtpu: 0.0.40
codegen_flags: <defaults>
</compile_context>

<pallas_src>
import jax
import jax.numpy as jnp
from jax import lax
from jax.experimental import pallas as pl
from jax.experimental.pallas import tpu as pltpu

LANE = 128
SUBLANE = 8
MIN_TILE = 16          # bf16 sublane packing -> keep P tiles multiples of 16


def _round_up(x, m):
    return ((x + m - 1) // m) * m


# ----------------------------------------------------------------------------
# Pallas kernel: PartialConv2d matmul + renormalization + BN partial sums
# ----------------------------------------------------------------------------
def _pconv_stats_kernel(x_ref, ratio_ref, um_ref, w_ref, b_ref,
                        out_ref, sum_ref, sq_ref):
    x = x_ref[...]                                   # (TM, K)        bf16 (pre-masked)
    ratio = ratio_ref[...]                           # (TM, 1)        f32
    um = um_ref[...]                                 # (TM, 1)        f32
    w = w_ref[...]                                   # (K, Cout_pad)  bf16
    bias = b_ref[...]                                # (1, Cout_pad)  f32

    # bf16 x bf16 -> f32 accumulation on the MXU.
    raw = jnp.dot(x, w, preferred_element_type=jnp.float32)       # (TM, Cout_pad)

    # Partial-conv renormalization; ratio/um are 0 on padded rows and mask holes,
    # so those rows come out exactly 0 and do not perturb the BN statistics.
    out = ((raw - bias) * ratio + bias) * um

    out_ref[...] = out.astype(out_ref.dtype)          # bf16 store (halves writeback)

    # Per-tile BatchNorm partial sums in f32 (from the pre-cast f32 values),
    # stored as skinny (1, 1, Cout_pad) blocks (no sublane broadcast).
    sum_ref[...] = jnp.sum(out, axis=0, keepdims=True)[None]
    sq_ref[...] = jnp.sum(out * out, axis=0, keepdims=True)[None]


# ----------------------------------------------------------------------------
# Wrapper-side layout plumbing
# ----------------------------------------------------------------------------
def _im2col(x_nhwc, kh, kw, stride, pad):
    n, h, w, c = x_nhwc.shape
    xp = jnp.pad(x_nhwc, ((0, 0), (pad, pad), (pad, pad), (0, 0)))
    oh = (h + 2 * pad - kh) // stride + 1
    ow = (w + 2 * pad - kw) // stride + 1
    patches = []
    for i in range(kh):
        for j in range(kw):
            patches.append(xp[:, i:i + stride * oh:stride,
                              j:j + stride * ow:stride, :])
    p = jnp.stack(patches, axis=3)                    # (N, OH, OW, kh*kw, C)
    return p.reshape(n * oh * ow, kh * kw * c), oh, ow


def _pick_tile(p_rows, kdim, cout_pad):
    """P-tile sizing from VMEM capacity with the full per-step working set."""
    try:
        vmem_bytes = int(pltpu.get_tpu_info().vmem_capacity_bytes)
    except Exception:
        vmem_bytes = 64 * 1024 * 1024                 # v7x-class fallback
    # Grid-invariant blocks (weight, bias): conservatively assume the runtime
    # still double-buffers them (pipeline_mode=pl.Buffered(1) would free one copy).
    const_bytes = 2 * (kdim * cout_pad * 2 + SUBLANE * cout_pad * 4)
    # Double-buffered streaming bytes per P row: bf16 patch row, the two f32
    # renorm columns (padded to 128 lanes in VMEM) and the bf16 output row ...
    stream_row = 2 * (kdim * 2 + 2 * LANE * 4 + cout_pad * 2)
    # ... plus single-buffered in-kernel f32 temporaries (raw / out / out*out).
    temp_row = 3 * cout_pad * 4
    stats_bytes = 2 * 2 * SUBLANE * cout_pad * 4
    budget = vmem_bytes // 2 - const_bytes - stats_bytes
    tm = 1024 if vmem_bytes > (100 << 20) else 512    # smaller start on 64 MiB v7x
    while tm > 256 and tm * (stream_row + temp_row) > budget:
        tm //= 2
    tm = int(min(tm, _round_up(p_rows, MIN_TILE)))
    tm = max(MIN_TILE, _round_up(tm, MIN_TILE))
    vmem_limit = int(min(vmem_bytes * 3 // 4, 100 * 1024 * 1024))
    return tm, vmem_limit


def pconv_encoder_forward(img, mask_in, weight, bias, gamma, beta,
                          kernel_size, stride=2, bn_eps=1e-5):
    """img, mask_in: (N, Cin, H, W) float32.  Returns (conv, mask) in NCHW."""
    n, cin, h, w = img.shape
    cout = weight.shape[0]
    k = kernel_size
    pad = (k - 1) // 2
    slide_winsize = float(cin * k * k)

    # --- wrapper prep (all O(N*H*W*Cin), fused by XLA) ------------------------
    # Fold the binary mask into the image, go NHWC bf16, im2col ONCE.
    x_nhwc = jnp.transpose(img * mask_in, (0, 2, 3, 1)).astype(jnp.bfloat16)
    x_p, oh, ow = _im2col(x_nhwc, k, k, stride, pad)          # (P, K) bf16

    # Partial-conv renormalization terms from the un-expanded mask:
    # msum == conv(mask, ones) == sum over Cin and the k x k window.
    msum = lax.reduce_window(jnp.sum(mask_in, axis=1), 0.0, lax.add,
                             window_dimensions=(1, k, k),
                             window_strides=(1, stride, stride),
                             padding=((0, 0), (pad, pad), (pad, pad)))
    update_mask = jnp.clip(msum, 0.0, 1.0)                    # (N, OH, OW)
    mask_ratio = slide_winsize / (msum + 1e-8) * update_mask  # exact f32 divide

    p_true = n * oh * ow
    kdim = k * k * cin
    cout_align = 256 if cout >= 256 else LANE                 # lane-dense + full MXU N
    cout_pad = _round_up(cout, cout_align)

    # PyTorch OIHW weight -> (K, Cout_pad) matching the patch ordering.
    w_mat = jnp.transpose(weight, (2, 3, 1, 0)).reshape(kdim, cout)
    w_mat = jnp.pad(w_mat, ((0, 0), (0, cout_pad - cout))).astype(jnp.bfloat16)
    bias_p = jnp.pad(bias.astype(jnp.float32),
                     (0, cout_pad - cout)).reshape(1, cout_pad)

    # --- P tiling -------------------------------------------------------------
    tm, vmem_limit = _pick_tile(p_true, kdim, cout_pad)
    num_tiles = -(-p_true // tm)
    if num_tiles > 1 and num_tiles % 2 == 1:
        # keep the "parallel" grid balanced across v7x's two TensorCores
        bal = -(-p_true // (num_tiles + 1))
        gran = LANE if bal >= LANE else MIN_TILE
        tm = max(MIN_TILE, _round_up(bal, gran))
        num_tiles = -(-p_true // tm)
    p_pad = num_tiles * tm

    # Padded rows carry ratio = um = 0 -> exact zeros downstream, BN sums safe.
    x_p = jnp.pad(x_p, ((0, p_pad - p_true), (0, 0)))
    ratio_p = jnp.pad(mask_ratio.reshape(p_true, 1), ((0, p_pad - p_true), (0, 0)))
    um_p = jnp.pad(update_mask.reshape(p_true, 1), ((0, p_pad - p_true), (0, 0)))

    cost = pl.CostEstimate(
        flops=2 * p_pad * kdim * cout_pad,
        transcendentals=0,
        bytes_accessed=(p_pad * kdim * 2 + 2 * p_pad * 4
                        + kdim * cout_pad * 2 + cout_pad * 4
                        + p_pad * cout_pad * 2
                        + 2 * num_tiles * cout_pad * 4))

    pconv_out, tsum, tsq = pl.pallas_call(
        _pconv_stats_kernel,
        grid=(num_tiles,),
        in_specs=[
            pl.BlockSpec((tm, kdim), lambda i: (i, 0)),         # masked patches
            pl.BlockSpec((tm, 1), lambda i: (i, 0)),            # mask_ratio column
            pl.BlockSpec((tm, 1), lambda i: (i, 0)),            # update_mask column
            pl.BlockSpec((kdim, cout_pad), lambda i: (0, 0)),   # weights (invariant)
            pl.BlockSpec((1, cout_pad), lambda i: (0, 0)),      # bias (invariant)
        ],
        out_specs=[
            pl.BlockSpec((tm, cout_pad), lambda i: (i, 0)),          # bf16 activations
            pl.BlockSpec((1, 1, cout_pad), lambda i: (i, 0, 0)),     # BN tile sums
            pl.BlockSpec((1, 1, cout_pad), lambda i: (i, 0, 0)),     # BN tile sum-sq
        ],
        out_shape=(
            jax.ShapeDtypeStruct((p_pad, cout_pad), jnp.bfloat16),
            jax.ShapeDtypeStruct((num_tiles, 1, cout_pad), jnp.float32),
            jax.ShapeDtypeStruct((num_tiles, 1, cout_pad), jnp.float32),
        ),
        compiler_params=pltpu.CompilerParams(
            dimension_semantics=("parallel",),
            vmem_limit_bytes=vmem_limit),
        cost_estimate=cost,
    )(x_p, ratio_p, um_p, w_mat, bias_p)

    # --- BN finalize + folded affine + ReLU + NCHW transpose: one fused XLA
    #     epilogue reading the bf16 activations exactly once. -------------------
    total = jnp.sum(tsum[:, 0, :cout], axis=0)
    total_sq = jnp.sum(tsq[:, 0, :cout], axis=0)
    mean = total / float(p_true)
    var = jnp.maximum(total_sq / float(p_true) - mean * mean, 0.0)   # biased var
    inv_std = lax.rsqrt(var + bn_eps)
    scale = gamma.astype(jnp.float32) * inv_std
    shift = beta.astype(jnp.float32) - mean * scale

    y = jnp.maximum(pconv_out[:p_true, :cout].astype(jnp.float32) * scale + shift,
                    0.0)
    conv = jnp.transpose(y.reshape(n, oh, ow, cout), (0, 3, 1, 2))
    mask = jnp.broadcast_to(update_mask.reshape(n, 1, oh, ow), (n, cout, oh, ow))
    return conv, mask


# ----------------------------------------------------------------------------
# Pure-JAX reference (operands rounded through bf16 to match the kernel's path)
# ----------------------------------------------------------------------------
def _ref_forward(img, mask_in, weight, bias, gamma, beta, k, stride=2, eps=1e-5):
    pad = (k - 1) // 2
    cin = weight.shape[1]
    x32 = (img * mask_in).astype(jnp.bfloat16).astype(jnp.float32)
    w32 = weight.astype(jnp.bfloat16).astype(jnp.float32)
    dn = lax.conv_dimension_numbers(img.shape, weight.shape,
                                    ('NCHW', 'OIHW', 'NCHW'))
    raw = lax.conv_general_dilated(x32, w32, (stride, stride),
                                   [(pad, pad), (pad, pad)],
                                   dimension_numbers=dn)
    msum = lax.conv_general_dilated(mask_in, jnp.ones_like(weight),
                                    (stride, stride),
                                    [(pad, pad), (pad, pad)],
                                    dimension_numbers=dn)
    slide = float(cin * k * k)
    ratio = slide / (msum + 1e-8)
    um = jnp.clip(msum, 0.0, 1.0)
    ratio = ratio * um
    bview = bias.reshape(1, -1, 1, 1)
    out = (raw - bview) * ratio + bview
    out = out * um
    # the kernel stores its activations in bf16; mirror that rounding here
    out = out.astype(jnp.bfloat16).astype(jnp.float32)
    mean = out.mean(axis=(0, 2, 3), keepdims=True)
    var = ((out - mean) ** 2).mean(axis=(0, 2, 3), keepdims=True)
    out = (out - mean) / jnp.sqrt(var + eps) * gamma.reshape(1, -1, 1, 1) \
        + beta.reshape(1, -1, 1, 1)
    return jnp.maximum(out, 0.0), um


if __name__ == "__main__":
    key = jax.random.PRNGKey(0)
    k_img, k_mask, k_w, k_b = jax.random.split(key, 4)

    N, CIN, COUT, H, W, K = 2, 4, 8, 16, 16, 3

    img = jax.random.normal(k_img, (N, CIN, H, W), dtype=jnp.float32)
    mask_in = (jax.random.uniform(k_mask, (N, CIN, H, W)) > 0.3
               ).astype(jnp.float32)

    # PartialConv2d weights/bias; BatchNorm2d gamma/beta (PyTorch default init).
    weight = 0.1 * jax.random.normal(k_w, (COUT, CIN, K, K), dtype=jnp.float32)
    bias = 0.1 * jax.random.normal(k_b, (COUT,), dtype=jnp.float32)
    gamma = jnp.ones((COUT,), dtype=jnp.float32)
    beta = jnp.zeros((COUT,), dtype=jnp.float32)

    fwd = jax.jit(pconv_encoder_forward,
                  static_argnames=("kernel_size", "stride", "bn_eps"))
    conv, mask = fwd(img, mask_in, weight, bias, gamma, beta,
                     kernel_size=K, stride=2)
    conv = jax.block_until_ready(conv)
    mask = jax.block_until_ready(mask)

    conv_ref, mask_ref = _ref_forward(img, mask_in, weight, bias, gamma, beta,
                                      K, stride=2)
    assert conv.shape == (N, COUT, H // 2, W // 2)
    assert mask.shape == (N, COUT, H // 2, W // 2)
    # bf16 matmul operands + bf16 activation store -> compare at 1e-2
    assert jnp.allclose(conv, conv_ref, rtol=1e-2, atol=1e-2), \
        float(jnp.max(jnp.abs(conv - conv_ref)))
    assert jnp.allclose(mask, mask_ref, rtol=1e-5, atol=1e-5)

    print("KERNEL_OK")
</pallas_src>

<mosaic_0001>
module attributes {stable_mosaic.version = 11 : i64} {
  func.func @_pconv_stats_kernel(%arg0: i32, %arg1: memref<128x36xbf16, #tpu.memory_space<vmem>>, %arg2: memref<128x1xf32, #tpu.memory_space<vmem>>, %arg3: memref<128x1xf32, #tpu.memory_space<vmem>>, %arg4: memref<36x128xbf16, #tpu.memory_space<vmem>>, %arg5: memref<1x128xf32, #tpu.memory_space<vmem>>, %arg6: memref<128x128xbf16, #tpu.memory_space<vmem>>, %arg7: memref<1x1x128xf32, #tpu.memory_space<vmem>>, %arg8: memref<1x1x128xf32, #tpu.memory_space<vmem>>) attributes {dimension_semantics = [#tpu.dimension_semantics<parallel>], iteration_bounds = array<i64: 1>, scalar_prefetch = 0 : i64, scratch_operands = 0 : i64, tpu.core_type = #tpu.core_type<tc>, window_params = [{transform_indices = @transform_0, window_bounds = array<i64: 128, 36>}, {transform_indices = @transform_1, window_bounds = array<i64: 128, 1>}, {transform_indices = @transform_2, window_bounds = array<i64: 128, 1>}, {pipeline_mode = #tpu.pipeline_mode<synchronous>, transform_indices = @transform_3, window_bounds = array<i64: 36, 128>}, {pipeline_mode = #tpu.pipeline_mode<synchronous>, transform_indices = @transform_4, window_bounds = array<i64: 1, 128>}, {transform_indices = @transform_5, window_bounds = array<i64: 128, 128>}, {transform_indices = @transform_6, window_bounds = array<i64: 1, 1, 128>}, {transform_indices = @transform_7, window_bounds = array<i64: 1, 1, 128>}]} {
    %c0 = arith.constant 0 : index
    %c0_0 = arith.constant 0 : index
    %0 = vector.load %arg1[%c0, %c0_0] : memref<128x36xbf16, #tpu.memory_space<vmem>>, vector<128x36xbf16>
    %c0_1 = arith.constant 0 : index
    %c0_2 = arith.constant 0 : index
    %1 = vector.load %arg2[%c0_1, %c0_2] : memref<128x1xf32, #tpu.memory_space<vmem>>, vector<128x1xf32>
    %c0_3 = arith.constant 0 : index
    %c0_4 = arith.constant 0 : index
    %2 = vector.load %arg3[%c0_3, %c0_4] : memref<128x1xf32, #tpu.memory_space<vmem>>, vector<128x1xf32>
    %c0_5 = arith.constant 0 : index
    %c0_6 = arith.constant 0 : index
    %3 = vector.load %arg4[%c0_5, %c0_6] : memref<36x128xbf16, #tpu.memory_space<vmem>>, vector<36x128xbf16>
    %c0_7 = arith.constant 0 : index
    %c0_8 = arith.constant 0 : index
    %4 = vector.load %arg5[%c0_7, %c0_8] : memref<1x128xf32, #tpu.memory_space<vmem>>, vector<1x128xf32>
    %cst = arith.constant dense<0.000000e+00> : vector<128x128xf32>
    %5 = tpu.matmul %0, %3, %cst {dimension_numbers = #tpu.dot_dimension_numbers<[1], [0], [0], [1], [0, 0, 1, 1], [], []>} : vector<128x36xbf16>, vector<36x128xbf16>, vector<128x128xf32> -> vector<128x128xf32>
    %6 = vector.broadcast %4 : vector<1x128xf32> to vector<128x128xf32>
    %7 = arith.subf %5, %6 : vector<128x128xf32>
    %8 = vector.broadcast %1 : vector<128x1xf32> to vector<128x128xf32>
    %9 = arith.mulf %7, %8 : vector<128x128xf32>
    %10 = vector.broadcast %4 : vector<1x128xf32> to vector<128x128xf32>
    %11 = arith.addf %9, %10 : vector<128x128xf32>
    %12 = vector.broadcast %2 : vector<128x1xf32> to vector<128x128xf32>
    %13 = arith.mulf %11, %12 : vector<128x128xf32>
    %14 = arith.truncf %13 : vector<128x128xf32> to vector<128x128xbf16>
    %c0_9 = arith.constant 0 : index
    %c0_10 = arith.constant 0 : index
    %15 = vector.load %arg6[%c0_9, %c0_10] : memref<128x128xbf16, #tpu.memory_space<vmem>>, vector<128x128xbf16>
    tpu.vector_store %arg6[%c0_9, %c0_10], %14 {strides = array<i32>} : memref<128x128xbf16, #tpu.memory_space<vmem>>, vector<128x128xbf16>,
    %cst_11 = arith.constant dense<0.000000e+00> : vector<128xf32>
    %16 = vector.multi_reduction <add>, %13, %cst_11 [0] : vector<128x128xf32> to vector<128xf32>
    %17 = vector.shape_cast %16 : vector<128xf32> to vector<1x128xf32>
    %18 = vector.shape_cast %17 : vector<1x128xf32> to vector<1x1x128xf32>
    %c0_12 = arith.constant 0 : index
    %c0_13 = arith.constant 0 : index
    %c0_14 = arith.constant 0 : index
    %19 = vector.load %arg7[%c0_12, %c0_13, %c0_14] : memref<1x1x128xf32, #tpu.memory_space<vmem>>, vector<1x1x128xf32>
    tpu.vector_store %arg7[%c0_12, %c0_13, %c0_14], %18 {strides = array<i32>} : memref<1x1x128xf32, #tpu.memory_space<vmem>>, vector<1x1x128xf32>,
    %20 = arith.mulf %13, %13 : vector<128x128xf32>
    %cst_15 = arith.constant dense<0.000000e+00> : vector<128xf32>
    %21 = vector.multi_reduction <add>, %20, %cst_15 [0] : vector<128x128xf32> to vector<128xf32>
    %22 = vector.shape_cast %21 : vector<128xf32> to vector<1x128xf32>
    %23 = vector.shape_cast %22 : vector<1x128xf32> to vector<1x1x128xf32>
    %c0_16 = arith.constant 0 : index
    %c0_17 = arith.constant 0 : index
    %c0_18 = arith.constant 0 : index
    %24 = vector.load %arg8[%c0_16, %c0_17, %c0_18] : memref<1x1x128xf32, #tpu.memory_space<vmem>>, vector<1x1x128xf32>
    tpu.vector_store %arg8[%c0_16, %c0_17, %c0_18], %23 {strides = array<i32>} : memref<1x1x128xf32, #tpu.memory_space<vmem>>, vector<1x1x128xf32>,
    return
  }
  func.func @transform_0(%arg0: i32) -> (i32, i32) {
    %c0_i32 = arith.constant 0 : i32
    %c0_i32_0 = arith.constant 0 : i32
    return %arg0, %c0_i32 : i32, i32
  }
  func.func @transform_1(%arg0: i32) -> (i32, i32) {
    %c0_i32 = arith.constant 0 : i32
    %c0_i32_0 = arith.constant 0 : i32
    return %arg0, %c0_i32 : i32, i32
  }
  func.func @transform_2(%arg0: i32) -> (i32, i32) {
    %c0_i32 = arith.constant 0 : i32
    %c0_i32_0 = arith.constant 0 : i32
    return %arg0, %c0_i32 : i32, i32
  }
  func.func @transform_3(%arg0: i32) -> (i32, i32) {
    %c0_i32 = arith.constant 0 : i32
    %c0_i32_0 = arith.constant 0 : i32
    %c0_i32_1 = arith.constant 0 : i32
    return %c0_i32, %c0_i32_0 : i32, i32
  }
  func.func @transform_4(%arg0: i32) -> (i32, i32) {
    %c0_i32 = arith.constant 0 : i32
    %c0_i32_0 = arith.constant 0 : i32
    %c0_i32_1 = arith.constant 0 : i32
    return %c0_i32, %c0_i32_0 : i32, i32
  }
  func.func @transform_5(%arg0: i32) -> (i32, i32) {
    %c0_i32 = arith.constant 0 : i32
    %c0_i32_0 = arith.constant 0 : i32
    return %arg0, %c0_i32 : i32, i32
  }
  func.func @transform_6(%arg0: i32) -> (i32, i32, i32) {
    %c0_i32 = arith.constant 0 : i32
    %c0_i32_0 = arith.constant 0 : i32
    %c0_i32_1 = arith.constant 0 : i32
    return %arg0, %c0_i32, %c0_i32_0 : i32, i32, i32
  }
  func.func @transform_7(%arg0: i32) -> (i32, i32, i32) {
    %c0_i32 = arith.constant 0 : i32
    %c0_i32_0 = arith.constant 0 : i32
    %c0_i32_1 = arith.constant 0 : i32
    return %arg0, %c0_i32, %c0_i32_0 : i32, i32, i32
  }
}

</mosaic_0001>

<bundles_post_ra>
// kernel: mul.6
= control target key start
LH: loop header
LB: loop body
LE: loop exit
PB: predicated region body
PF: predicated region fallthrough
CT: control target
= control target key end

     0   :  { %s34_s0 = inlined_call_operand.vmem [shape: f32[128,1], index: 0, kind: input, shape index: {}]   ;;  %s35_s1 = inlined_call_operand.vmem [shape: f32[128,1], index: 1, kind: input, shape index: {}]   ;;  %s36_s2 = inlined_call_operand.vmem [shape: f32[128,1], index: 2, kind: output, shape index: {}]  }
   0x1   :  { %v3_v0 = vld [vmem:[%s34_s0] sm:$0x1] }
   0x2   :  { %v4_v1 = vld [vmem:[%s35_s1] sm:$0x1] }
   0x3   :  { %v7_v2 = vmul.f32 %v4_v1, %v3_v0 }
   0x5   :  { %9 = vst [vmem:[%s36_s2] sm:$0x1] %v7_v2 }

// kernel: pconv_encoder_forward.1
= control target key start
LH: loop header
LB: loop body
LE: loop exit
PB: predicated region body
PF: predicated region fallthrough
CT: control target
= control target key end

     0   :  { %v795_v1 = vmov 0   ;;  %vm133_vm0 = vcmask 293888   ;;  %vm158_vm1 = vcmask 1041408   ;;  %s1100_s3 = inlined_call_operand.vmem [shape: bf16[36,128], index: 3, kind: input, shape index: {}]   ;;  %s1101_s1 = inlined_call_operand.vmem [shape: f32[128,1], index: 1, kind: input, shape index: {}]   ;;  %s1102_s0 = inlined_call_operand.vmem [shape: bf16[128,36], index: 0, kind: input, shape index: {}]   ;;  %s1103_s2 = inlined_call_operand.vmem [shape: f32[128,1], index: 2, kind: input, shape index: {}]   ;;  %s1104_s4 = inlined_call_operand.vmem [shape: f32[1,128], index: 4, kind: input, shape index: {}]   ;;  %s1105_s5 = inlined_call_operand.vmem [shape: bf16[128,128], index: 5, kind: output, shape index: {0}]   ;;  %s1106_s6 = inlined_call_operand.vmem [shape: f32[1,1,128], index: 6, kind: output, shape index: {1}]   ;;  %s1107_s7 = inlined_call_operand.vmem [shape: f32[1,1,128], index: 7, kind: output, shape index: {2}]  }
   0x1   :  { %v784_v0 = vld [vmem:[%s1100_s3] sm:$0xff]   ;;  %782 = vset.pattern.permute.xlu0 %v795_v1  ;;  %783 = vset.pattern.permute.xlu1 %v795_v1  ;;  %v785_v2 = vld [vmem:[%s1100_s3 + $0x8] sm:$0xff]   ;;  %v786_v3 = vld [vmem:[%s1100_s3 + $0x10] ss:$0 sps:$4 sm:$0x33]  }
   0x2   :  { %751 = vmatprep.subr.bf16.mxu0 %v784_v0  ;;  %773 = vmatprep.subr.bf16.mxu1 %v784_v0  ;;  %v40_v4 = vld [vmem:[%s1101_s1] sm:$0xff]  ;;  %v42_v7 = vld [vmem:[%s1101_s1 + $0x10] sm:$0xff]  ;;  %v41_v8 = vld [vmem:[%s1101_s1 + $0x8] sm:$0xff]  ;;  %v160_v9 = vsel %vm158_vm1, %v786_v3, 0 }
   0x3   :  { %752 = vmatpush3.bf16.msra.mxu0 %v784_v0  ;;  %776 = vmatpush3.bf16.msra.mxu1 %v784_v0  ;;  %v787_v5 = vld [vmem:[%s1102_s0] sm:$0xff]   ;;  %v789_v10 = vld [vmem:[%s1102_s0 + $0x8] sm:$0xff]   ;;  %v43_v12 = vld [vmem:[%s1101_s1 + $0x18] sm:$0xff] }
   0x4   :  { %753 = vmatprep.subr.bf16.mxu0 %v785_v2  ;;  %774 = vmatprep.subr.bf16.mxu1 %v785_v2  ;;  %v788_v6 = vld [vmem:[%s1102_s0 + $0x20] sm:$0xff]   ;;  %v790_v11 = vld [vmem:[%s1102_s0 + $0x28] sm:$0xff]   ;;  %v791_v14 = vld [vmem:[%s1102_s0 + $0x10] sm:$0xff]  }
   0x5   :  { %283 = vperm.xlu0 %782, %v40_v4   ;;  %757 = vmatprep.mubr.msk.bf16.mxu0 %vm133_vm0, %v787_v5  ;;  %v44_v13 = vld [vmem:[%s1101_s1 + $0x20] sm:$0xff]  ;;  %v792_v15 = vld [vmem:[%s1102_s0 + $0x30] sm:$0xff]   ;;  %v57_v17 = vld [vmem:[%s1103_s2 + $0x8] sm:$0xff] }
   0x6   :  { %765 = vmatprep.mubr.msk.bf16.mxu1 %vm133_vm0, %v788_v6  ;;  %293 = vperm.xlu1 %783, %v42_v7   ;;  %v56_v16 = vld [vmem:[%s1103_s2] sm:$0xff]  ;;  %v793_v18 = vld [vmem:[%s1102_s0 + $0x18] sm:$0xff]   ;;  %v58_v20 = vld [vmem:[%s1103_s2 + $0x10] sm:$0xff] }
   0x7   :  { %754 = vmatpush3.bf16.msra.mxu0 %v785_v2  ;;  %777 = vmatpush3.bf16.msra.mxu1 %v785_v2  ;;  %v794_v19 = vld [vmem:[%s1102_s0 + $0x38] sm:$0xff]   ;;  %v45_v21 = vld [vmem:[%s1101_s1 + $0x28] sm:$0xff]  ;;  %v46_v23 = vld [vmem:[%s1101_s1 + $0x30] sm:$0xff] }
   0x8   :  { %779 = vmatprep.subr.msk.bf16.mxu0 %vm158_vm1, %v786_v3  ;;  %780 = vmatprep.subr.msk.bf16.mxu1 %vm158_vm1, %v786_v3  ;;  %v59_v22 = vld [vmem:[%s1103_s2 + $0x18] sm:$0xff]  ;;  %v60_v24 = vld [vmem:[%s1103_s2 + $0x20] sm:$0xff]  ;;  %v61_v26 = vld [vmem:[%s1103_s2 + $0x28] sm:$0xff] }
   0x9   :  { %288 = vperm.xlu0 %782, %v41_v8   ;;  %v47_v25 = vld [vmem:[%s1101_s1 + $0x38] sm:$0xff]  ;;  %v48_v27 = vld [vmem:[%s1101_s1 + $0x40] sm:$0xff]  ;;  %v62_v28 = vld [vmem:[%s1103_s2 + $0x30] sm:$0xff] }
   0xa   :  { %298 = vperm.xlu1 %783, %v43_v12   ;;  %v49_v29 = vld [vmem:[%s1101_s1 + $0x48] sm:$0xff]  ;;  %v63_v30 = vld [vmem:[%s1103_s2 + $0x38] sm:$0xff]  ;;  %v50_v31 = vld [vmem:[%s1101_s1 + $0x50] sm:$0xff] }
   0xb   :  { %756 = vmatpush3.bf16.msra.mxu0 %v160_v9  ;;  %778 = vmatpush3.bf16.msra.mxu1 %v160_v9  ;;  %v64_v32 = vld [vmem:[%s1103_s2 + $0x40] sm:$0xff]  ;;  %v51_v33 = vld [vmem:[%s1101_s1 + $0x58] sm:$0xff]  ;;  %v65_v34 = vld [vmem:[%s1103_s2 + $0x48] sm:$0xff] }
   0xc   :  { %v52_v35 = vld [vmem:[%s1101_s1 + $0x60] sm:$0xff]  ;;  %v66_v36 = vld [vmem:[%s1103_s2 + $0x50] sm:$0xff]  ;;  %v53_v37 = vld [vmem:[%s1101_s1 + $0x68] sm:$0xff] }
   0xd   :  { %303 = vperm.xlu0 %782, %v44_v13   ;;  %v67_v38 = vld [vmem:[%s1103_s2 + $0x58] sm:$0xff]  ;;  %v54_v39 = vld [vmem:[%s1101_s1 + $0x70] sm:$0xff]  ;;  %v68_v40 = vld [vmem:[%s1103_s2 + $0x60] sm:$0xff] }
   0xe   :  { %758 = vmatmul.mubr.msk.bf16.vlgmr.msra.gmra.mrb[0].mxu0 %vm133_vm0, %v789_v10  ;;  %766 = vmatmul.mubr.msk.bf16.vlgmr.msra.gmra.mrb[0].mxu1 %vm133_vm0, %v790_v11  ;;  %v55_v41 = vld [vmem:[%s1101_s1 + $0x78] sm:$0xff]  ;;  %v69_v42 = vld [vmem:[%s1103_s2 + $0x68] sm:$0xff]  ;;  %v70_v43 = vld [vmem:[%s1103_s2 + $0x70] sm:$0xff] }
   0xf   :  { %761 = vmatprep.mubr.msk.bf16.mxu0 %vm133_vm0, %v791_v14  ;;  %769 = vmatprep.mubr.msk.bf16.mxu1 %vm133_vm0, %v792_v15  ;;  %v71_v44 = vld [vmem:[%s1103_s2 + $0x78] sm:$0xff]  ;;  %v996_v5 = vld [vmem:[%s1104_s4] ss:$0 sm:$0xff] }
  0x10   :  { %395 = vperm.xlu1 %783, %v56_v16  }
  0x11   :  { %400 = vperm.xlu0 %782, %v57_v17  }
  0x14   :  { %405 = vperm.xlu1 %783, %v58_v20  }
  0x15   :  { %308 = vperm.xlu0 %782, %v45_v21  }
  0x16   :  { %762 = vmatmul.mubr.msk.bf16.gmra.mrb[4].mxu0 %vm133_vm0, %v793_v18  ;;  %770 = vmatmul.mubr.msk.bf16.gmra.mrb[4].mxu1 %vm133_vm0, %v794_v19 }
  0x18   :  { %410 = vperm.xlu1 %783, %v59_v22  }
  0x19   :  { %313 = vperm.xlu0 %782, %v46_v23  }
  0x1c   :  { %415 = vperm.xlu1 %783, %v60_v24  }
  0x1d   :  { %318 = vperm.xlu0 %782, %v47_v25  }
  0x20   :  { %420 = vperm.xlu1 %783, %v61_v26  }
  0x21   :  { %323 = vperm.xlu0 %782, %v48_v27  }
  0x24   :  { %425 = vperm.xlu1 %783, %v62_v28  }
  0x25   :  { %328 = vperm.xlu0 %782, %v49_v29  }
  0x28   :  { %430 = vperm.xlu1 %783, %v63_v30  }
  0x29   :  { %333 = vperm.xlu0 %782, %v50_v31  }
  0x2c   :  { %435 = vperm.xlu1 %783, %v64_v32  }
  0x2d   :  { %338 = vperm.xlu0 %782, %v51_v33  }
  0x30   :  { %440 = vperm.xlu1 %783, %v65_v34  }
  0x31   :  { %343 = vperm.xlu0 %782, %v52_v35  }
  0x34   :  { %445 = vperm.xlu1 %783, %v66_v36  }
  0x35   :  { %348 = vperm.xlu0 %782, %v53_v37  }
  0x38   :  { %450 = vperm.xlu1 %783, %v67_v38  }
  0x39   :  { %353 = vperm.xlu0 %782, %v54_v39  }
  0x3c   :  { %455 = vperm.xlu1 %783, %v68_v40  }
  0x3d   :  { %358 = vperm.xlu0 %782, %v55_v41  }
  0x40   :  { %460 = vperm.xlu1 %783, %v69_v42  }
  0x41   :  { %465 = vperm.xlu0 %782, %v70_v43  }
  0x44   :  { %470 = vperm.xlu1 %783, %v71_v44  }
  0x84   :  { %v284_v45 = vpop.permute.xlu0 %283 }
  0x85   :  { %v294_v46 = vpop.permute.xlu1 %293 }
  0x88   :  { %v289_v47 = vpop.permute.xlu0 %288 }
  0x89   :  { %v299_v48 = vpop.permute.xlu1 %298 }
  0x8c   :  { %v973_v49 = vpop.permute.xlu0 %303 }
  0x8f   :  { %v396_v50 = vpop.permute.xlu1 %395 }
  0x90   :  { %v975_v51 = vpop.permute.xlu0 %400 }
  0x93   :  { %v406_v52 = vpop.permute.xlu1 %405 }
  0x94   :  { %v977_v53 = vpop.permute.xlu0 %308 }
  0x97   :  { %v411_v54 = vpop.permute.xlu1 %410 }
  0x98   :  { %v979_v55 = vpop.permute.xlu0 %313 }
  0x9b   :  { %v981_v56 = vpop.permute.xlu1 %415 }
  0x9c   :  { %v983_v57 = vpop.permute.xlu0 %318 }
  0x9f   :  { %v985_v58 = vpop.permute.xlu1 %420 }
  0xa0   :  { %v324_v59 = vpop.permute.xlu0 %323 }
  0xa3   :  { %v987_v60 = vpop.permute.xlu1 %425 }
  0xa4   :  { %v329_v61 = vpop.permute.xlu0 %328 }
  0xa7   :  { %v989_v62 = vpop.permute.xlu1 %430 }
  0xa8   :  { %v334_v63 = vpop.permute.xlu0 %333 }
  0xab   :  { %v436_v0 = vpop.permute.xlu1 %435 }
  0xac   :  { %v339_v1 = vpop.permute.xlu0 %338 }
  0xaf   :  { %v441_v2 = vpop.permute.xlu1 %440 }
  0xb0   :  { %v991_v3 = vpop.permute.xlu0 %343 }
  0xb3   :  { %v446_v4 = vpop.permute.xlu1 %445 }
  0xb4   :  { %v998_v6 = vpop.permute.xlu0 %348 }
  0xb7   :  { %v451_v7 = vpop.permute.xlu1 %450 }
  0xb8   :  { %v354_v36 = vpop.permute.xlu0 %353 }
  0xbb   :  { %v1012_v37 = vpop.permute.xlu1 %455 }
  0xe1   :  { %v759_v8 = vpop.f32.mrb[0].mxu0  ;;  %v767_v9 = vpop.f32.mrb[0].mxu1 }
  0xe2   :  { %v267_v10 = vsub.f32 %v759_v8, %v996_v5  ;;  %v275_v11 = vsub.f32 %v767_v9, %v996_v5  ;;  %v196_v12 = vpop.f32.mrb[1].mxu0  ;;  %v228_v13 = vpop.f32.mrb[1].mxu1 }
  0xe3   :  { %v265_v14 = vsub.f32 %v196_v12, %v996_v5  ;;  %v273_v15 = vsub.f32 %v228_v13, %v996_v5  ;;  %v760_v16 = vpop.f32.mrb[2].mxu0  ;;  %v768_v17 = vpop.f32.mrb[2].mxu1 }
  0xe4   :  { %v363_v18 = vmul.f32 %v294_v46, %v267_v10  ;;  %v371_v19 = vmul.f32 %v334_v63, %v275_v11  ;;  %v268_v20 = vsub.f32 %v760_v16, %v996_v5  ;;  %v276_v21 = vsub.f32 %v768_v17, %v996_v5  ;;  %v199_v22 = vpop.f32.mrb[3].mxu0  ;;  %v231_v23 = vpop.f32.mrb[3].mxu1 }
  0xe5   :  { %v361_v24 = vmul.f32 %v284_v45, %v265_v14  ;;  %v369_v25 = vmul.f32 %v324_v59, %v273_v15  ;;  %v266_v26 = vsub.f32 %v199_v22, %v996_v5  ;;  %v274_v27 = vsub.f32 %v231_v23, %v996_v5 }
  0xe6   :  { %v379_v28 = vadd.f32 %v996_v5, %v363_v18  ;;  %v387_v29 = vadd.f32 %v996_v5, %v371_v19  ;;  %v364_v30 = vmul.f32 %v299_v48, %v268_v20  ;;  %v372_v31 = vmul.f32 %v339_v1, %v276_v21  ;;  %v359_v20 = vpop.permute.xlu0 %358  ;;  %v461_v21 = vpop.permute.xlu1 %460 }
  0xe7   :  { %v377_v32 = vadd.f32 %v996_v5, %v361_v24  ;;  %v385_v33 = vadd.f32 %v996_v5, %v369_v25  ;;  %v362_v34 = vmul.f32 %v289_v47, %v266_v26  ;;  %v370_v35 = vmul.f32 %v329_v61, %v274_v27 }
  0xe8   :  { %v380_v38 = vadd.f32 %v996_v5, %v364_v30  ;;  %v388_v39 = vadd.f32 %v996_v5, %v372_v31  ;;  %v475_v45 = vmul.f32 %v406_v52, %v379_v28  ;;  %v1018_v46 = vmul.f32 %v446_v4, %v387_v29 }
  0xe9   :  { %v473_v40 = vmul.f32 %v396_v50, %v377_v32  ;;  %v378_v41 = vadd.f32 %v996_v5, %v362_v34  ;;  %v386_v42 = vadd.f32 %v996_v5, %v370_v35  ;;  %v763_v43 = vpop.f32.mrb[4].mxu0  ;;  %v771_v44 = vpop.f32.mrb[4].mxu1  ;;  %v1022_v63 = vmul.f32 %v436_v0, %v385_v33 }
  0xea   :  { %v476_v48 = vmul.f32 %v411_v54, %v380_v38  ;;  %v1020_v47 = vmul.f32 %v451_v7, %v388_v39  ;;  %v212_v59 = vpop.f32.mrb[5].mxu0  ;;  %v244_v61 = vpop.f32.mrb[5].mxu1  ;;  %v593_v14 = vmul.f32 %v475_v45, %v475_v45 }
  0xeb   :  { %v474_v1 = vmul.f32 %v975_v51, %v378_v41  ;;  %v1025_v8 = vmul.f32 %v441_v2, %v386_v42  ;;  %v764_v50 = vpop.f32.mrb[6].mxu0  ;;  %v772_v9 = vpop.f32.mrb[6].mxu1  ;;  %v591_v10 = vmul.f32 %v473_v40, %v473_v40  ;;  %v271_v51 = vsub.f32 %v763_v43, %v996_v5 }
  0xec   :  { %v701_v11 = vpack.c.bf16 %v476_v48, %v475_v45  ;;  %v721_v52 = vpack.c.bf16 %v1020_v47, %v1018_v46  ;;  %v215_v4 = vpop.f32.mrb[7].mxu0  ;;  %v247_v12 = vpop.f32.mrb[7].mxu1  ;;  %v279_v2 = vsub.f32 %v771_v44, %v996_v5  ;;  %v269_v15 = vsub.f32 %v212_v59, %v996_v5 }
  0xed   :  { %v696_v54 = vpack.c.bf16 %v474_v1, %v473_v40  ;;  %v569_v7 = vadd.f32 %v474_v1, %v473_v40  ;;  %v592_v13 = vmul.f32 %v474_v1, %v474_v1  ;;  %v716_v0 = vpack.c.bf16 %v1025_v8, %v1022_v63  ;;  %v466_v41 = vpop.permute.xlu0 %465  ;;  %v471_v42 = vpop.permute.xlu1 %470 }
  0xee   :  { %733 = vst [vmem:[%s1105_s5 + $0x8] sm:$0xff] %v701_v11   ;;  %737 = vst [vmem:[%s1105_s5 + $0x28] sm:$0xff] %v721_v52   ;;  %v277_v18 = vsub.f32 %v244_v61, %v996_v5  ;;  %v272_v19 = vsub.f32 %v764_v50, %v996_v5  ;;  %v367_v22 = vmul.f32 %v979_v55, %v271_v51 }
  0xef   :  { %697 = vst [vmem:[%s1105_s5] sm:$0xff] %v696_v54   ;;  %v570_v16 = vadd.f32 %v569_v7, %v475_v45  ;;  %v607_v17 = vadd.f32 %v592_v13, %v591_v10  ;;  %736 = vst [vmem:[%s1105_s5 + $0x20] sm:$0xff] %v716_v0   ;;  %v375_v23 = vmul.f32 %v354_v36, %v279_v2 }
  0xf0   :  { %v365_v24 = vmul.f32 %v973_v49, %v269_v15  ;;  %v280_v25 = vsub.f32 %v772_v9, %v996_v5  ;;  %v594_v26 = vmul.f32 %v476_v48, %v476_v48  ;;  %v368_v29 = vmul.f32 %v983_v57, %v272_v19 }
  0xf1   :  { %v608_v27 = vadd.f32 %v607_v17, %v593_v14  ;;  %v571_v28 = vadd.f32 %v570_v16, %v476_v48  ;;  %v383_v30 = vadd.f32 %v996_v5, %v367_v22  ;;  %v373_v32 = vmul.f32 %v991_v3, %v277_v18 }
  0xf2   :  { %v381_v31 = vadd.f32 %v996_v5, %v365_v24  ;;  %v376_v33 = vmul.f32 %v359_v20, %v280_v25  ;;  %v391_v34 = vadd.f32 %v996_v5, %v375_v23  ;;  %v384_v35 = vadd.f32 %v996_v5, %v368_v29 }
  0xf3   :  { %v609_v55 = vadd.f32 %v608_v27, %v594_v26  ;;  %v270_v49 = vsub.f32 %v215_v4, %v996_v5  ;;  %v479_v57 = vmul.f32 %v987_v60, %v383_v30  ;;  %v278_v3 = vsub.f32 %v247_v12, %v996_v5 }
  0xf4   :  { %v477_v36 = vmul.f32 %v981_v56, %v381_v31  ;;  %v392_v38 = vadd.f32 %v996_v5, %v376_v33  ;;  %v480_v39 = vmul.f32 %v989_v62, %v384_v35  ;;  %v487_v45 = vmul.f32 %v466_v41, %v391_v34 }
  0xf5   :  { %v366_v40 = vmul.f32 %v977_v53, %v270_v49  ;;  %v389_v48 = vadd.f32 %v996_v5, %v373_v32  ;;  %v374_v60 = vmul.f32 %v998_v6, %v278_v3  ;;  %v597_v6 = vmul.f32 %v479_v57, %v479_v57 }
  0xf6   :  { %v572_v43 = vadd.f32 %v571_v28, %v477_v36  ;;  %v595_v44 = vmul.f32 %v477_v36, %v477_v36  ;;  %v711_v59 = vpack.c.bf16 %v480_v39, %v479_v57  ;;  %v488_v61 = vmul.f32 %v471_v42, %v392_v38 }
  0xf7   :  { %v382_v1 = vadd.f32 %v996_v5, %v366_v40  ;;  %v390_v50 = vadd.f32 %v996_v5, %v374_v60  ;;  %v485_v9 = vmul.f32 %v1012_v37, %v389_v48  ;;  %v598_v7 = vmul.f32 %v480_v39, %v480_v39 }
  0xf8   :  { %v610_v56 = vadd.f32 %v609_v55, %v595_v44  ;;  %735 = vst [vmem:[%s1105_s5 + $0x18] sm:$0xff] %v711_v59   ;;  %v731_v53 = vpack.c.bf16 %v488_v61, %v487_v45  ;;  %v599_v37 = vmul.f32 %v1022_v63, %v1022_v63  ;;  %v600_v51 = vmul.f32 %v1025_v8, %v1025_v8 }
  0xf9   :  { %v478_v62 = vmul.f32 %v985_v58, %v382_v1  ;;  %v486_v4 = vmul.f32 %v461_v21, %v390_v50  ;;  %v601_v16 = vmul.f32 %v1018_v46, %v1018_v46  ;;  %v602_v19 = vmul.f32 %v1020_v47, %v1020_v47 }
  0xfa   :  { %739 = vst [vmem:[%s1105_s5 + $0x38] sm:$0xff] %v731_v53   ;;  %v605_v27 = vmul.f32 %v487_v45, %v487_v45  ;;  %v606_v29 = vmul.f32 %v488_v61, %v488_v61 }
  0xfb   :  { %v706_v10 = vpack.c.bf16 %v478_v62, %v477_v36  ;;  %v573_v11 = vadd.f32 %v572_v43, %v478_v62  ;;  %v596_v52 = vmul.f32 %v478_v62, %v478_v62  ;;  %v726_v58 = vpack.c.bf16 %v486_v4, %v485_v9 }
  0xfc   :  { %v604_v25 = vmul.f32 %v486_v4, %v486_v4 }
  0xfd   :  { %734 = vst [vmem:[%s1105_s5 + $0x10] sm:$0xff] %v706_v10   ;;  %v574_v12 = vadd.f32 %v573_v11, %v479_v57  ;;  %v611_v54 = vadd.f32 %v610_v56, %v596_v52  ;;  %738 = vst [vmem:[%s1105_s5 + $0x30] sm:$0xff] %v726_v58  }
  0xff   :  { %v575_v5 = vadd.f32 %v574_v12, %v480_v39  ;;  %v612_v13 = vadd.f32 %v611_v54, %v597_v6 }
 0x101   :  { %v576_v0 = vadd.f32 %v575_v5, %v1022_v63  ;;  %v613_v14 = vadd.f32 %v612_v13, %v598_v7  ;;  %v603_v63 = vmul.f32 %v485_v9, %v485_v9 }
 0x103   :  { %v614_v2 = vadd.f32 %v613_v14, %v599_v37  ;;  %v577_v15 = vadd.f32 %v576_v0, %v1025_v8 }
 0x105   :  { %v578_v17 = vadd.f32 %v577_v15, %v1018_v46  ;;  %v615_v18 = vadd.f32 %v614_v2, %v600_v51 }
 0x107   :  { %v579_v20 = vadd.f32 %v578_v17, %v1020_v47  ;;  %v616_v21 = vadd.f32 %v615_v18, %v601_v16 }
 0x109   :  { %v580_v22 = vadd.f32 %v579_v20, %v485_v9  ;;  %v617_v23 = vadd.f32 %v616_v21, %v602_v19 }
 0x10b   :  { %v581_v24 = vadd.f32 %v580_v22, %v486_v4  ;;  %v618_v26 = vadd.f32 %v617_v23, %v603_v63 }
 0x10d   :  { %v582_v8 = vadd.f32 %v581_v24, %v487_v45  ;;  %v619_v28 = vadd.f32 %v618_v26, %v604_v25 }
 0x10f   :  { %v583_v30 = vadd.f32 %v582_v8, %v488_v61  ;;  %v620_v31 = vadd.f32 %v619_v28, %v605_v27 }
 0x111   :  { %v584_v46 = vrot.slane %v583_v30, 4  ;;  %v621_v32 = vadd.f32 %v620_v31, %v606_v29 }
 0x113   :  { %v585_v33 = vadd.f32 %v584_v46, %v583_v30  ;;  %v622_v34 = vrot.slane %v621_v32, 4 }
 0x115   :  { %v586_v55 = vrot.slane %v585_v33, 2  ;;  %v623_v35 = vadd.f32 %v622_v34, %v621_v32 }
 0x117   :  { %v587_v47 = vadd.f32 %v586_v55, %v585_v33  ;;  %v624_v49 = vrot.slane %v623_v35, 2 }
 0x119   :  { %v588_v36 = vrot.slane %v587_v47, 1  ;;  %v625_v38 = vadd.f32 %v624_v49, %v623_v35 }
 0x11b   :  { %v589_v57 = vadd.f32 %v588_v36, %v587_v47  ;;  %v626_v39 = vrot.slane %v625_v38, 1 }
 0x11d   :  { %590 = vst [vmem:[%s1106_s6] sm:$0x1] %v589_v57  ;;  %v627_v40 = vadd.f32 %v626_v39, %v625_v38 }
 0x11f   :  { %628 = vst [vmem:[%s1107_s7] sm:$0x1] %v627_v40 }

</bundles_post_ra>
